<compile_context>
chip_gen: v5e
topology: v5e:2x2
jax: 0.10.0
libtpu: 0.0.40
codegen_flags: <defaults>
</compile_context>

<pallas_src>
import jax
import jax.numpy as jnp
from jax.experimental import pallas as pl
from jax.experimental.pallas import tpu as pltpu


def decoder_kernel(zc_rec_ref, zd_rec_ref, zc_pred_ref, zd_pred_ref,
                   wzc_ref, wzd_ref,
                   rw1t_ref, rb1_ref, rw2t_ref, rb2_ref,
                   pw1t_ref, pb1_ref, pw2t_ref, pb2_ref,
                   x_ref, y_ref):
    # zc_*_ref : (B*C,  L)   flattened activations, L on lanes
    # zd_*_ref : (B*Zd, L)
    # wzc_ref  : (B*C, B*C)  kron(I_B, Wz[:, :C])   -- block-diag z_net weight
    # wzd_ref  : (B*C, B*Zd) kron(I_B, Wz[:, C:])
    # *w1t_ref : (L, H)      first MLP linear, pre-transposed
    # *b1_ref  : (1, H)
    # *w2t_ref : (H, L)      second MLP linear, pre-transposed
    # *b2_ref  : (1, L)
    # x_ref    : (B*C, seq_len),  y_ref: (B*C, pred_len)
    wzc = wzc_ref[...]
    wzd = wzd_ref[...]

    # ---- rec branch -------------------------------------------------------
    z_rec = (jnp.dot(wzc, zc_rec_ref[...], preferred_element_type=jnp.float32)
             + jnp.dot(wzd, zd_rec_ref[...], preferred_element_type=jnp.float32))
    h_rec = jnp.tanh(jnp.dot(z_rec, rw1t_ref[...],
                             preferred_element_type=jnp.float32) + rb1_ref[...])
    x_ref[...] = (jnp.dot(h_rec, rw2t_ref[...],
                          preferred_element_type=jnp.float32)
                  + rb2_ref[...]).astype(x_ref.dtype)

    # ---- pred branch ------------------------------------------------------
    z_pred = (jnp.dot(wzc, zc_pred_ref[...], preferred_element_type=jnp.float32)
              + jnp.dot(wzd, zd_pred_ref[...], preferred_element_type=jnp.float32))
    h_pred = jnp.tanh(jnp.dot(z_pred, pw1t_ref[...],
                              preferred_element_type=jnp.float32) + pb1_ref[...])
    y_ref[...] = (jnp.dot(h_pred, pw2t_ref[...],
                          preferred_element_type=jnp.float32)
                  + pb2_ref[...]).astype(y_ref.dtype)


def prepare_decoder_params(params, batch_size, enc_in):
    """One-time parameter preparation (hoisted out of the forward pass)."""
    f32 = jnp.float32
    eye_b = jnp.eye(batch_size, dtype=f32)
    wz = params["wz"].astype(f32)
    H = params["rec_w1"].shape[0]
    Ls = params["rec_w1"].shape[1]           # seq_len
    Lp = params["pred_w1"].shape[1]          # pred_len
    return {
        # block-diagonal z_net weights acting on whole-batch (B*C, L) slabs
        "wzc_blk": jnp.kron(eye_b, wz[:, :enc_in]),           # (B*C, B*C)
        "wzd_blk": jnp.kron(eye_b, wz[:, enc_in:]),           # (B*C, B*Zd)
        # rec_net MLP (over seq_len): pre-transposed weights, 2-D biases
        "rw1t": params["rec_w1"].T.astype(f32),               # (Ls, H)
        "rb1": params["rec_b1"].reshape(1, H).astype(f32),
        "rw2t": params["rec_w2"].T.astype(f32),               # (H, Ls)
        "rb2": params["rec_b2"].reshape(1, Ls).astype(f32),
        # pred_net MLP (over pred_len)
        "pw1t": params["pred_w1"].T.astype(f32),               # (Lp, H)
        "pb1": params["pred_b1"].reshape(1, H).astype(f32),
        "pw2t": params["pred_w2"].T.astype(f32),               # (H, Lp)
        "pb2": params["pred_b2"].reshape(1, Lp).astype(f32),
    }


def decoder_forward(prep, zc_rec, zd_rec, zc_pred, zd_pred):
    """Fused decoder forward: one pallas_call, grid=(), whole batch per block."""
    B, C, Ls = zc_rec.shape
    Zd = zd_rec.shape[1]
    Lp = zc_pred.shape[2]
    f32 = jnp.float32

    # Flatten (B, K, L) -> (B*K, L): trivial leading-dim merge, left to XLA.
    zc_rec_f = zc_rec.reshape(B * C, Ls).astype(f32)
    zd_rec_f = zd_rec.reshape(B * Zd, Ls).astype(f32)
    zc_pred_f = zc_pred.reshape(B * C, Lp).astype(f32)
    zd_pred_f = zd_pred.reshape(B * Zd, Lp).astype(f32)

    x2d, y2d = pl.pallas_call(
        decoder_kernel,
        out_shape=(jax.ShapeDtypeStruct((B * C, Ls), f32),
                   jax.ShapeDtypeStruct((B * C, Lp), f32)),
        # No grid, no BlockSpecs: every operand is a single whole-array VMEM
        # block (total footprint << 1 MiB), so there is no per-step pipeline
        # overhead and every weight is DMA'd exactly once.
    )(zc_rec_f, zd_rec_f, zc_pred_f, zd_pred_f,
      prep["wzc_blk"], prep["wzd_blk"],
      prep["rw1t"], prep["rb1"], prep["rw2t"], prep["rb2"],
      prep["pw1t"], prep["pb1"], prep["pw2t"], prep["pb2"])

    # Final reshape + permute(0,2,1) of the torch module: layout plumbing.
    x = jnp.transpose(x2d.reshape(B, C, Ls), (0, 2, 1))        # (B, Ls, C)
    y = jnp.transpose(y2d.reshape(B, C, Lp), (0, 2, 1))        # (B, Lp, C)
    return x, y


def decoder_forward_ref(zc_rec, zd_rec, zc_pred, zd_pred, params):
    """Pure-JAX reference mirroring the torch module (dropout = identity)."""
    def branch(zc, zd, w1, b1, w2, b2):
        zcat = jnp.concatenate([zc, zd], axis=1)                 # (B, K, L)
        z = jnp.einsum("ck,bkl->bcl", params["wz"], zcat)        # z_net
        h = jnp.tanh(jnp.einsum("bcl,hl->bch", z, w1) + b1)      # Linear + tanh
        o = jnp.einsum("bch,lh->bcl", h, w2) + b2                # Linear
        return jnp.transpose(o, (0, 2, 1))                       # (B, L, C)
    x = branch(zc_rec, zd_rec, params["rec_w1"], params["rec_b1"],
               params["rec_w2"], params["rec_b2"])
    y = branch(zc_pred, zd_pred, params["pred_w1"], params["pred_b1"],
               params["pred_w2"], params["pred_b2"])
    return x, y


if __name__ == "__main__":
    # configs: enc_in=4 (channels), zd_dim=4, seq_len=16, pred_len=8,
    #          hidden_dim=32, hidden_layers=2, is_bn=False, batch=2
    B, enc_in, zd_dim = 2, 4, 4
    seq_len, pred_len, hidden_dim = 16, 8, 32

    key = jax.random.PRNGKey(0)
    ks = jax.random.split(key, 12)

    # z_net weight: identity init as in the torch module (eye(enc_in, zd_dim+enc_in)).
    wz = jnp.eye(enc_in, zd_dim + enc_in, dtype=jnp.float32)

    params = {
        "wz": wz,
        # rec_net (MLP over seq_len): Linear(seq_len, H) -> tanh -> Linear(H, seq_len)
        "rec_w1": 0.1 * jax.random.normal(ks[0], (hidden_dim, seq_len), jnp.float32),
        "rec_b1": 0.1 * jax.random.normal(ks[1], (hidden_dim,), jnp.float32),
        "rec_w2": 0.1 * jax.random.normal(ks[2], (seq_len, hidden_dim), jnp.float32),
        "rec_b2": 0.1 * jax.random.normal(ks[3], (seq_len,), jnp.float32),
        # pred_net (MLP over pred_len)
        "pred_w1": 0.1 * jax.random.normal(ks[4], (hidden_dim, pred_len), jnp.float32),
        "pred_b1": 0.1 * jax.random.normal(ks[5], (hidden_dim,), jnp.float32),
        "pred_w2": 0.1 * jax.random.normal(ks[6], (pred_len, hidden_dim), jnp.float32),
        "pred_b2": 0.1 * jax.random.normal(ks[7], (pred_len,), jnp.float32),
    }
    # TODO(synk): is_bn=True (BatchNorm1d before the last Linear) is not implemented;
    # this config uses is_bn=False, and Dropout is inference-mode identity.

    zc_rec = jax.random.normal(ks[8], (B, enc_in, seq_len), jnp.float32)
    zd_rec = jax.random.normal(ks[9], (B, zd_dim, seq_len), jnp.float32)
    zc_pred = jax.random.normal(ks[10], (B, enc_in, pred_len), jnp.float32)
    zd_pred = jax.random.normal(ks[11], (B, zd_dim, pred_len), jnp.float32)

    # One-time parameter prep (hoisted out of the forward).
    prep = prepare_decoder_params(params, batch_size=B, enc_in=enc_in)
    prep = jax.tree_util.tree_map(jax.block_until_ready, prep)

    fwd = jax.jit(decoder_forward)
    x, y = fwd(prep, zc_rec, zd_rec, zc_pred, zd_pred)
    jax.block_until_ready((x, y))

    # silent correctness check against the pure-JAX reference (tight f32 tolerance)
    x_ref, y_ref = decoder_forward_ref(zc_rec, zd_rec, zc_pred, zd_pred, params)
    if not (jnp.allclose(x, x_ref, atol=1e-5, rtol=1e-5)
            and jnp.allclose(y, y_ref, atol=1e-5, rtol=1e-5)):
        raise AssertionError("Pallas Decoder kernel mismatch vs JAX reference")

    print("KERNEL_OK")
</pallas_src>

<mosaic_0001>
module attributes {stable_mosaic.version = 11 : i64} {
  func.func @decoder_kernel(%arg0: memref<8x16xf32, #tpu.memory_space<vmem>>, %arg1: memref<8x16xf32, #tpu.memory_space<vmem>>, %arg2: memref<8x8xf32, #tpu.memory_space<vmem>>, %arg3: memref<8x8xf32, #tpu.memory_space<vmem>>, %arg4: memref<8x8xf32, #tpu.memory_space<vmem>>, %arg5: memref<8x8xf32, #tpu.memory_space<vmem>>, %arg6: memref<16x32xf32, #tpu.memory_space<vmem>>, %arg7: memref<1x32xf32, #tpu.memory_space<vmem>>, %arg8: memref<32x16xf32, #tpu.memory_space<vmem>>, %arg9: memref<1x16xf32, #tpu.memory_space<vmem>>, %arg10: memref<8x32xf32, #tpu.memory_space<vmem>>, %arg11: memref<1x32xf32, #tpu.memory_space<vmem>>, %arg12: memref<32x8xf32, #tpu.memory_space<vmem>>, %arg13: memref<1x8xf32, #tpu.memory_space<vmem>>, %arg14: memref<8x16xf32, #tpu.memory_space<vmem>>, %arg15: memref<8x8xf32, #tpu.memory_space<vmem>>) attributes {dimension_semantics = [], scalar_prefetch = 0 : i64, scratch_operands = 0 : i64, tpu.core_type = #tpu.core_type<tc>} {
    %c0 = arith.constant 0 : index
    %c0_0 = arith.constant 0 : index
    %0 = vector.load %arg4[%c0, %c0_0] : memref<8x8xf32, #tpu.memory_space<vmem>>, vector<8x8xf32>
    %c0_1 = arith.constant 0 : index
    %c0_2 = arith.constant 0 : index
    %1 = vector.load %arg5[%c0_1, %c0_2] : memref<8x8xf32, #tpu.memory_space<vmem>>, vector<8x8xf32>
    %c0_3 = arith.constant 0 : index
    %c0_4 = arith.constant 0 : index
    %2 = vector.load %arg0[%c0_3, %c0_4] : memref<8x16xf32, #tpu.memory_space<vmem>>, vector<8x16xf32>
    %cst = arith.constant dense<0.000000e+00> : vector<8x16xf32>
    %3 = tpu.matmul %0, %2, %cst {dimension_numbers = #tpu.dot_dimension_numbers<[1], [0], [0], [1], [0, 0, 1, 1], [], []>} : vector<8x8xf32>, vector<8x16xf32>, vector<8x16xf32> -> vector<8x16xf32>
    %c0_5 = arith.constant 0 : index
    %c0_6 = arith.constant 0 : index
    %4 = vector.load %arg1[%c0_5, %c0_6] : memref<8x16xf32, #tpu.memory_space<vmem>>, vector<8x16xf32>
    %cst_7 = arith.constant dense<0.000000e+00> : vector<8x16xf32>
    %5 = tpu.matmul %1, %4, %cst_7 {dimension_numbers = #tpu.dot_dimension_numbers<[1], [0], [0], [1], [0, 0, 1, 1], [], []>} : vector<8x8xf32>, vector<8x16xf32>, vector<8x16xf32> -> vector<8x16xf32>
    %6 = arith.addf %3, %5 : vector<8x16xf32>
    %c0_8 = arith.constant 0 : index
    %c0_9 = arith.constant 0 : index
    %7 = vector.load %arg6[%c0_8, %c0_9] : memref<16x32xf32, #tpu.memory_space<vmem>>, vector<16x32xf32>
    %cst_10 = arith.constant dense<0.000000e+00> : vector<8x32xf32>
    %8 = tpu.matmul %6, %7, %cst_10 {dimension_numbers = #tpu.dot_dimension_numbers<[1], [0], [0], [1], [0, 0, 1, 1], [], []>} : vector<8x16xf32>, vector<16x32xf32>, vector<8x32xf32> -> vector<8x32xf32>
    %c0_11 = arith.constant 0 : index
    %c0_12 = arith.constant 0 : index
    %9 = vector.load %arg7[%c0_11, %c0_12] : memref<1x32xf32, #tpu.memory_space<vmem>>, vector<1x32xf32>
    %10 = vector.broadcast %9 : vector<1x32xf32> to vector<8x32xf32>
    %11 = arith.addf %8, %10 : vector<8x32xf32>
    %12 = math.tanh %11 : vector<8x32xf32>
    %c0_13 = arith.constant 0 : index
    %c0_14 = arith.constant 0 : index
    %13 = vector.load %arg8[%c0_13, %c0_14] : memref<32x16xf32, #tpu.memory_space<vmem>>, vector<32x16xf32>
    %cst_15 = arith.constant dense<0.000000e+00> : vector<8x16xf32>
    %14 = tpu.matmul %12, %13, %cst_15 {dimension_numbers = #tpu.dot_dimension_numbers<[1], [0], [0], [1], [0, 0, 1, 1], [], []>} : vector<8x32xf32>, vector<32x16xf32>, vector<8x16xf32> -> vector<8x16xf32>
    %c0_16 = arith.constant 0 : index
    %c0_17 = arith.constant 0 : index
    %15 = vector.load %arg9[%c0_16, %c0_17] : memref<1x16xf32, #tpu.memory_space<vmem>>, vector<1x16xf32>
    %16 = vector.broadcast %15 : vector<1x16xf32> to vector<8x16xf32>
    %17 = arith.addf %14, %16 : vector<8x16xf32>
    %c0_18 = arith.constant 0 : index
    %c0_19 = arith.constant 0 : index
    %18 = vector.load %arg14[%c0_18, %c0_19] : memref<8x16xf32, #tpu.memory_space<vmem>>, vector<8x16xf32>
    tpu.vector_store %arg14[%c0_18, %c0_19], %17 {strides = array<i32>} : memref<8x16xf32, #tpu.memory_space<vmem>>, vector<8x16xf32>,
    %c0_20 = arith.constant 0 : index
    %c0_21 = arith.constant 0 : index
    %19 = vector.load %arg2[%c0_20, %c0_21] : memref<8x8xf32, #tpu.memory_space<vmem>>, vector<8x8xf32>
    %cst_22 = arith.constant dense<0.000000e+00> : vector<8x8xf32>
    %20 = tpu.matmul %0, %19, %cst_22 {dimension_numbers = #tpu.dot_dimension_numbers<[1], [0], [0], [1], [0, 0, 1, 1], [], []>} : vector<8x8xf32>, vector<8x8xf32>, vector<8x8xf32> -> vector<8x8xf32>
    %c0_23 = arith.constant 0 : index
    %c0_24 = arith.constant 0 : index
    %21 = vector.load %arg3[%c0_23, %c0_24] : memref<8x8xf32, #tpu.memory_space<vmem>>, vector<8x8xf32>
    %cst_25 = arith.constant dense<0.000000e+00> : vector<8x8xf32>
    %22 = tpu.matmul %1, %21, %cst_25 {dimension_numbers = #tpu.dot_dimension_numbers<[1], [0], [0], [1], [0, 0, 1, 1], [], []>} : vector<8x8xf32>, vector<8x8xf32>, vector<8x8xf32> -> vector<8x8xf32>
    %23 = arith.addf %20, %22 : vector<8x8xf32>
    %c0_26 = arith.constant 0 : index
    %c0_27 = arith.constant 0 : index
    %24 = vector.load %arg10[%c0_26, %c0_27] : memref<8x32xf32, #tpu.memory_space<vmem>>, vector<8x32xf32>
    %cst_28 = arith.constant dense<0.000000e+00> : vector<8x32xf32>
    %25 = tpu.matmul %23, %24, %cst_28 {dimension_numbers = #tpu.dot_dimension_numbers<[1], [0], [0], [1], [0, 0, 1, 1], [], []>} : vector<8x8xf32>, vector<8x32xf32>, vector<8x32xf32> -> vector<8x32xf32>
    %c0_29 = arith.constant 0 : index
    %c0_30 = arith.constant 0 : index
    %26 = vector.load %arg11[%c0_29, %c0_30] : memref<1x32xf32, #tpu.memory_space<vmem>>, vector<1x32xf32>
    %27 = vector.broadcast %26 : vector<1x32xf32> to vector<8x32xf32>
    %28 = arith.addf %25, %27 : vector<8x32xf32>
    %29 = math.tanh %28 : vector<8x32xf32>
    %c0_31 = arith.constant 0 : index
    %c0_32 = arith.constant 0 : index
    %30 = vector.load %arg12[%c0_31, %c0_32] : memref<32x8xf32, #tpu.memory_space<vmem>>, vector<32x8xf32>
    %cst_33 = arith.constant dense<0.000000e+00> : vector<8x8xf32>
    %31 = tpu.matmul %29, %30, %cst_33 {dimension_numbers = #tpu.dot_dimension_numbers<[1], [0], [0], [1], [0, 0, 1, 1], [], []>} : vector<8x32xf32>, vector<32x8xf32>, vector<8x8xf32> -> vector<8x8xf32>
    %c0_34 = arith.constant 0 : index
    %c0_35 = arith.constant 0 : index
    %32 = vector.load %arg13[%c0_34, %c0_35] : memref<1x8xf32, #tpu.memory_space<vmem>>, vector<1x8xf32>
    %33 = vector.broadcast %32 : vector<1x8xf32> to vector<8x8xf32>
    %34 = arith.addf %31, %33 : vector<8x8xf32>
    %c0_36 = arith.constant 0 : index
    %c0_37 = arith.constant 0 : index
    %35 = vector.load %arg15[%c0_36, %c0_37] : memref<8x8xf32, #tpu.memory_space<vmem>>, vector<8x8xf32>
    tpu.vector_store %arg15[%c0_36, %c0_37], %34 {strides = array<i32>} : memref<8x8xf32, #tpu.memory_space<vmem>>, vector<8x8xf32>,
    return
  }
}

</mosaic_0001>

<bundles_post_ra>
// kernel: decoder_forward.1
= control target key start
LH: loop header
LB: loop body
LE: loop exit
PB: predicated region body
PF: predicated region fallthrough
CT: control target
= control target key end

     0   :  { %21 = vsyncpa [#allocation3], 0  ;;  %vm55_vm0 = vcmask 64512   ;;  %s530_s0 = inlined_call_operand.vmem [shape: f32[8,16], index: 0, kind: input, shape index: {}]   ;;  %s531_s1 = inlined_call_operand.vmem [shape: f32[8,16], index: 1, kind: input, shape index: {}]   ;;  %s532_s2 = inlined_call_operand.vmem [shape: f32[8,8], index: 2, kind: input, shape index: {}]   ;;  %s533_s3 = inlined_call_operand.vmem [shape: f32[8,8], index: 3, kind: input, shape index: {}]   ;;  %s534_s4 = inlined_call_operand.vmem [shape: f32[8,8], index: 4, kind: input, shape index: {}]   ;;  %s535_s5 = inlined_call_operand.vmem [shape: f32[8,8], index: 5, kind: input, shape index: {}]   ;;  %s536_s6 = inlined_call_operand.vmem [shape: f32[16,32], index: 6, kind: input, shape index: {}]   ;;  %s537_s7 = inlined_call_operand.vmem [shape: f32[1,32], index: 7, kind: input, shape index: {}]   ;;  %s538_s8 = inlined_call_operand.vmem [shape: f32[32,16], index: 8, kind: input, shape index: {}]   ;;  %s539_s9 = inlined_call_operand.vmem [shape: f32[1,16], index: 9, kind: input, shape index: {}]   ;;  %s540_s10 = inlined_call_operand.vmem [shape: f32[8,32], index: 10, kind: input, shape index: {}]   ;;  %s541_s11 = inlined_call_operand.vmem [shape: f32[1,32], index: 11, kind: input, shape index: {}]   ;;  %s542_s12 = inlined_call_operand.vmem [shape: f32[32,8], index: 12, kind: input, shape index: {}]   ;;  %s543_s13 = inlined_call_operand.vmem [shape: f32[1,8], index: 13, kind: input, shape index: {}]   ;;  %s544_s14 = inlined_call_operand.hbm [shape: f32[8,16], index: 14, kind: output, shape index: {0}]   ;;  %s545_s15 = inlined_call_operand.hbm [shape: f32[8,8], index: 15, kind: output, shape index: {1}]  }
   0x1   :  { %v54_v0 = vld [vmem:[%s531_s1] sm:$0xff] }
   0x2   :  { %v53_v1 = vld [vmem:[%s530_s0] sm:$0xff]  ;;  %74 = vmatpush.msra.mxu0 %v54_v0 }
   0x3   :  { %v52_v2 = vld [vmem:[%s535_s5] sm:$0xff]  ;;  %97 = vmatpush.msra.mxu1 %v53_v1 }
   0x4   :  { %v51_v3 = vld [vmem:[%s534_s4] sm:$0xff]  ;;  %301 = vmatmul.msk.f32.vlgmr.msra.gmra.mxu0 %vm55_vm0, %v52_v2 }
   0x5   :  { %v167_v4 = vld [vmem:[%s533_s3] sm:$0xff]  ;;  %302 = vmatmul.msk.f32.vlgmr.msra.gmra.mxu1 %vm55_vm0, %v51_v3 }
   0x6   :  { %v166_v5 = vld [vmem:[%s532_s2] sm:$0xff]  ;;  %183 = vmatpush.msrb.mxu0 %v167_v4 }
   0x7   :  { %203 = vmatpush.msrb.mxu1 %v166_v5 }
   0x8   :  { %22 = vsyncpa [#allocation5], 0  ;;  %v103_v6 = vld [vmem:[%s536_s6 + $0x8] sm:$0xff]  ;;  %v102_v7 = vld [vmem:[%s536_s6] sm:$0xff]  ;;  %vm108_vm1 = vcmask 130048   ;;  %vm141_vm2 = vcmask 261120  }
   0x9   :  { %126 = vmatpush.msra.mxu2 %v103_v6  ;;  %v208_v8 = vld [vmem:[%s540_s10] sm:$0xff]  ;;  %v136_v15 = vld [vmem:[%s538_s8 + $0x18] sm:$0xff]  ;;  %v135_v16 = vld [vmem:[%s538_s8 + $0x10] sm:$0xff]  ;;  %s276_s30 = sshll.u32 %s544_s14, 4  ;;  %s372_s6 = smov [#allocation4]   ;;  %s277_s30 = int_to_ptr.hbm [resolvable:$true] %s276_s30 }
   0xa   :  { %157 = vmatpush.msra.mxu3 %v136_v15  ;;  %v134_v17 = vld [vmem:[%s538_s8 + $0x8] sm:$0xff]  ;;  %v133_v18 = vld [vmem:[%s538_s8] sm:$0xff]  ;;  %v240_v19 = vld [vmem:[%s542_s12 + $0x18] sm:$0xff]  ;;  %s285_s17 = sshll.u32 %s372_s6, 4  ;;  %s287_s18 = sshll.u32 %s545_s15, 4  ;;  %s286_s17 = int_to_ptr.vmem [resolvable:$true] %s285_s17  ;;  %s288_s18 = int_to_ptr.hbm [resolvable:$true] %s287_s18 }
   0xb   :  { %127 = vmatpush.msra.mxu2 %v102_v7  ;;  %v239_v20 = vld [vmem:[%s542_s12 + $0x10] sm:$0xff]  ;;  %v238_v21 = vld [vmem:[%s542_s12 + $0x8] sm:$0xff]  ;;  %v237_v22 = vld [vmem:[%s542_s12] sm:$0xff] }
   0xc   :  { %305 = vmatmul.msk.f32.vlgmr.msrb.gmra.mxu0 %vm55_vm0, %v52_v2  ;;  %158 = vmatpush.msra.mxu3 %v135_v16  ;;  %v311_v23 = vld [vmem:[%s537_s7] ss:$0 sm:$0xff]  ;;  %s371_s7 = smov [#allocation2]  }
   0xd   :  { %306 = vmatmul.msk.f32.vlgmr.msrb.gmra.mxu1 %vm55_vm0, %v51_v3  ;;  %231 = vmatpush.msrb.mxu2 %v208_v8  ;;  %v312_v26 = vld [vmem:[%s541_s11] ss:$0 sm:$0xff]  ;;  %s274_s5 = sshll.u32 %s371_s7, 4  ;;  %s275_s5 = int_to_ptr.vmem [resolvable:$true] %s274_s5 }
   0xe   :  { %159 = vmatpush.msra.mxu3 %v134_v17  ;;  %v313_v31 = vld [vmem:[%s539_s9] ss:$0 sm:$0xff] }
   0xf   :  { %v314_v34 = vld [vmem:[%s543_s13] ss:$0 sm:$0xff] }
  0x10   :  { %160 = vmatpush.msra.mxu3 %v133_v18 }
  0x12   :  { %260 = vmatpush.msrb.mxu3 %v240_v19 }
  0x14   :  { %261 = vmatpush.msrb.mxu3 %v239_v20 }
  0x16   :  { %262 = vmatpush.msrb.mxu3 %v238_v21 }
  0x18   :  { %263 = vmatpush.msrb.mxu3 %v237_v22 }
  0x81   :  { %v76_v9 = vpop.f32.mrf.mxu0 }
  0x82   :  { %v99_v10 = vpop.f32.mrf.mxu1 }
  0x83   :  { %v100_v11 = vadd.f32 %v99_v10, %v76_v9 }
  0x85   :  { %303 = vmatmul.msk.f32.vlgmr.msra.gmra.mxu2 %vm108_vm1, %v100_v11 }
  0x89   :  { %v185_v12 = vpop.f32.mrf.mxu0 }
  0x8a   :  { %v205_v13 = vpop.f32.mrf.mxu1 }
  0x8b   :  { %v206_v14 = vadd.f32 %v205_v13, %v185_v12 }
  0x8d   :  { %307 = vmatmul.msk.f32.vlgmr.msrb.gmra.mxu2 %vm55_vm0, %v206_v14 }
 0x108   :  { %v129_v24 = vpop.f32.mrf.mxu2 }
 0x109   :  { %v130_v25 = vadd.f32 %v311_v23, %v129_v24 }
 0x10b   :  { %315 = vtanh.f32 %v130_v25 }
 0x110   :  { %v233_v27 = vpop.f32.mrf.mxu2 }
 0x111   :  { %v316_v28 = vpop.eup %315  ;;  %v234_v29 = vadd.f32 %v312_v26, %v233_v27 }
 0x112   :  { %304 = vmatmul.msk.f32.vlgmr.msra.gmra.mxu3 %vm141_vm2, %v316_v28 }
 0x113   :  { %317 = vtanh.f32 %v234_v29 }
 0x119   :  { %v318_v30 = vpop.eup %317 }
 0x11a   :  { %308 = vmatmul.msk.f32.vlgmr.msrb.gmra.mxu3 %vm141_vm2, %v318_v30 }
 0x195   :  { %v162_v32 = vpop.f32.mrf.mxu3 }
 0x196   :  { %v163_v33 = vadd.f32 %v313_v31, %v162_v32 }
 0x198   :  { %165 = vst.msk [vmem:[#allocation2] sm:$0xff] %vm108_vm1, %v163_v33 }
 0x199   :  { %279 = dma.vmem_to_hbm [thread:$0]  %s275_s5, 128, %s277_s30, [#allocation3]  }
 0x19d   :  { %v265_v35 = vpop.f32.mrf.mxu3 }
 0x19e   :  { %v266_v36 = vadd.f32 %v314_v34, %v265_v35 }
 0x1a0   :  { %268 = vst.msk [vmem:[#allocation4] sm:$0xff] %vm55_vm0, %v266_v36 }
 0x1a1   :  { %290 = dma.vmem_to_hbm [thread:$0]  %s286_s17, 128, %s288_s18, [#allocation5]  }
 0x1a2   :  { %367 = dma.done.wait [#allocation3], 128  }
 0x1a3   :  { %368 = vsyncadd [#allocation3], 4294967168 }
 0x1a4   :  { %369 = dma.done.wait [#allocation5], 128  }
 0x1a5   :  { %370 = vsyncadd [#allocation5], 4294967168 }
 0x1a6   :  { %299 = vsyncpa [#allocation3], 1 }
 0x1a7   :  { %300 = vsyncpa [#allocation5], 1 }

</bundles_post_ra>
